<compile_context>
chip_gen: v7x
topology: tpu7x:2x2x1
jax: 0.10.0
libtpu: 0.0.40
codegen_flags: <defaults>
</compile_context>

<pallas_src>
import jax
import jax.numpy as jnp
from jax.experimental import pallas as pl
from jax.experimental.pallas import tpu as pltpu


def _round_up(n: int, m: int) -> int:
    return ((n + m - 1) // m) * m


# --------------------------------------------------------------------------
# Kernel: 3 x (matmul + folded-bias + ReLU) + final matmul + folded-bias.
#   x_ref:  (TB, d_in)  bf16      w*_ref: bf16, lane-dense padded (resident)
#   b_ref:  (4, 256)    f32       out_ref: (TB, 128) bf16
# --------------------------------------------------------------------------
def mlp_kernel(x_ref, w1_ref, w2_ref, w3_ref, w4_ref, b_ref, out_ref):
    def layer(h, w_ref, row, relu):
        n = w_ref.shape[1]                            # static padded out-width
        y = jnp.dot(h, w_ref[...], preferred_element_type=jnp.float32)
        y = y + b_ref[row:row + 1, 0:n]               # folded bias (BN in w/b)
        if relu:
            # f32 bias+ReLU (v5e has no bf16 VALU), bf16 hand-off to next MXU.
            return jnp.maximum(y, 0.0).astype(jnp.bfloat16)
        return y

    h = x_ref[...]                                    # bf16 activations
    h = layer(h, w1_ref, 0, True)                     # Linear+BN+ReLU (Dropout=id)
    h = layer(h, w2_ref, 1, True)
    h = layer(h, w3_ref, 2, True)
    out_ref[...] = layer(h, w4_ref, 3, False).astype(jnp.bfloat16)


# --------------------------------------------------------------------------
# Raw (PyTorch-like) parameters, f32, weights stored as [in, out].
# --------------------------------------------------------------------------
def init_params(key, input_size, hidden_sizes, num_classes):
    sizes = [input_size] + list(hidden_sizes)
    raw = {}
    for li, (fin, fout) in enumerate(zip(sizes[:-1], sizes[1:]), start=1):
        key, kw, kb, kg, kbe, km, kv = jax.random.split(key, 7)
        bound = 1.0 / jnp.sqrt(jnp.float32(fin))
        raw[f"w{li}"] = jax.random.uniform(kw, (fin, fout), jnp.float32, -bound, bound)
        raw[f"b{li}"] = jax.random.uniform(kb, (fout,), jnp.float32, -bound, bound)
        raw[f"gamma{li}"] = 1.0 + 0.1 * jax.random.normal(kg, (fout,), jnp.float32)
        raw[f"beta{li}"] = 0.1 * jax.random.normal(kbe, (fout,), jnp.float32)
        raw[f"mean{li}"] = 0.1 * jax.random.normal(km, (fout,), jnp.float32)
        raw[f"var{li}"] = jnp.abs(1.0 + 0.1 * jax.random.normal(kv, (fout,), jnp.float32))
    fin, fout = sizes[-1], num_classes
    key, kw, kb = jax.random.split(key, 3)
    bound = 1.0 / jnp.sqrt(jnp.float32(fin))
    raw["w4"] = jax.random.uniform(kw, (fin, fout), jnp.float32, -bound, bound)
    raw["b4"] = jax.random.uniform(kb, (fout,), jnp.float32, -bound, bound)
    return raw


# --------------------------------------------------------------------------
# Fold BN into weights/bias (exact, f32), pad internal dims lane-dense to 128
# (input feature dim left unpadded — full-extent block), cast weights to bf16,
# pack the 4 folded biases into ONE (4, 256) f32 operand (one DMA, not four).
# --------------------------------------------------------------------------
def fold_and_pad_params(raw, num_classes, eps=1e-5):
    ws, bs = [], []
    for li in range(1, 4):
        scale = raw[f"gamma{li}"] / jnp.sqrt(raw[f"var{li}"] + eps)
        shift = raw[f"beta{li}"] - raw[f"mean{li}"] * scale
        ws.append(raw[f"w{li}"] * scale[None, :])        # column-wise fold
        bs.append(raw[f"b{li}"] * scale + shift)
    ws.append(raw["w4"])
    bs.append(raw["b4"])

    pad_in = [ws[0].shape[0]] + [_round_up(w.shape[0], 128) for w in ws[1:]]
    pad_out = [_round_up(w.shape[1], 128) for w in ws]
    w_pad = [
        jnp.pad(w, ((0, pi - w.shape[0]), (0, po - w.shape[1]))).astype(jnp.bfloat16)
        for w, pi, po in zip(ws, pad_in, pad_out)
    ]
    bias_w = max(pad_out)
    bias_pack = jnp.stack(
        [jnp.pad(b, (0, bias_w - b.shape[0])) for b in bs], axis=0
    ).astype(jnp.float32)                                 # (4, 256)

    return {
        "w": w_pad,
        "bias": bias_pack,
        "d_in": pad_in[0],
        "d_out": pad_out[-1],
        "num_classes": num_classes,
    }


# --------------------------------------------------------------------------
# Batch-tile selection: >=2 grid steps when possible (v7x megacore), tile a
# multiple of 16 (bf16 sublane packing), pad waste < one granule per step.
# --------------------------------------------------------------------------
def _pick_batch_tile(B: int, tb: int):
    n_steps = max(2, pl.cdiv(B, tb))
    TB = max(16, _round_up(pl.cdiv(B, n_steps), 16))
    B_pad = _round_up(B, TB)
    return TB, B_pad


# --------------------------------------------------------------------------
# Wrapper: pad batch, cast to bf16, run batch-tiled pallas_call, slice logits.
# --------------------------------------------------------------------------
def job_matching_forward(x, kp, *, tb=1024):
    B, fin = x.shape
    d_in, d_out = kp["d_in"], kp["d_out"]
    assert fin == d_in, (fin, d_in)
    w1, w2, w3, w4 = kp["w"]
    bias = kp["bias"]

    TB, B_pad = _pick_batch_tile(B, tb)
    # bf16 HBM input stream (kernel feeds the MXU in bf16 anyway).
    x_p = jnp.pad(x, ((0, B_pad - B), (0, 0))).astype(jnp.bfloat16)

    const = lambda i: (0, 0)                 # weights/bias resident across grid
    out_p = pl.pallas_call(
        mlp_kernel,
        out_shape=jax.ShapeDtypeStruct((B_pad, d_out), jnp.bfloat16),
        grid_spec=pltpu.PrefetchScalarGridSpec(
            num_scalar_prefetch=0,
            grid=(B_pad // TB,),
            in_specs=[
                pl.BlockSpec((TB, d_in), lambda i: (i, 0)),
                pl.BlockSpec(w1.shape, const),
                pl.BlockSpec(w2.shape, const),
                pl.BlockSpec(w3.shape, const),
                pl.BlockSpec(w4.shape, const),
                pl.BlockSpec(bias.shape, const),
            ],
            out_specs=pl.BlockSpec((TB, d_out), lambda i: (i, 0)),
        ),
        compiler_params=pltpu.CompilerParams(
            dimension_semantics=("parallel",)),
    )(x_p, w1, w2, w3, w4, bias)

    return out_p[:B, :kp["num_classes"]].astype(jnp.float32)


# --------------------------------------------------------------------------
# Pure-JAX reference with exact eval-mode nn.Module semantics (f32, unpadded).
# --------------------------------------------------------------------------
def reference_forward(x, raw, eps=1e-5):
    h = x
    for li in range(1, 4):
        h = h @ raw[f"w{li}"] + raw[f"b{li}"]
        h = (h - raw[f"mean{li}"]) / jnp.sqrt(raw[f"var{li}"] + eps)
        h = h * raw[f"gamma{li}"] + raw[f"beta{li}"]
        h = jnp.maximum(h, 0.0)
    return h @ raw["w4"] + raw["b4"]


if __name__ == "__main__":
    # Small shapes matching the module defaults:
    # input_size=64, hidden=[256, 128, 64], num_classes=2
    B, INPUT_SIZE, HIDDEN, NUM_CLASSES = 8, 64, [256, 128, 64], 2

    key = jax.random.PRNGKey(0)
    key, kx = jax.random.split(key)
    x = jax.random.normal(kx, (B, INPUT_SIZE), jnp.float32)

    raw = init_params(key, INPUT_SIZE, HIDDEN, NUM_CLASSES)
    kp = fold_and_pad_params(raw, NUM_CLASSES)

    out = job_matching_forward(x, kp)
    out = jax.block_until_ready(out)

    ref = reference_forward(x, raw)
    assert out.shape == (B, NUM_CLASSES)
    # bf16 MXU inputs / bf16 output stream (f32 accumulate) -> relaxed tolerance.
    assert jnp.allclose(out, ref, atol=3e-2, rtol=3e-2), \
        float(jnp.max(jnp.abs(out - ref)))

    print("KERNEL_OK")
</pallas_src>

<mosaic_0001>
module attributes {stable_mosaic.version = 11 : i64} {
  func.func @mlp_kernel(%arg0: i32, %arg1: memref<16x64xbf16, #tpu.memory_space<vmem>>, %arg2: memref<64x256xbf16, #tpu.memory_space<vmem>>, %arg3: memref<256x128xbf16, #tpu.memory_space<vmem>>, %arg4: memref<128x128xbf16, #tpu.memory_space<vmem>>, %arg5: memref<128x128xbf16, #tpu.memory_space<vmem>>, %arg6: memref<4x256xf32, #tpu.memory_space<vmem>>, %arg7: memref<16x128xbf16, #tpu.memory_space<vmem>>) attributes {dimension_semantics = [#tpu.dimension_semantics<parallel>], iteration_bounds = array<i64: 1>, scalar_prefetch = 0 : i64, scratch_operands = 0 : i64, tpu.core_type = #tpu.core_type<tc>, window_params = [{transform_indices = @transform_0, window_bounds = array<i64: 16, 64>}, {pipeline_mode = #tpu.pipeline_mode<synchronous>, transform_indices = @transform_1, window_bounds = array<i64: 64, 256>}, {pipeline_mode = #tpu.pipeline_mode<synchronous>, transform_indices = @transform_2, window_bounds = array<i64: 256, 128>}, {pipeline_mode = #tpu.pipeline_mode<synchronous>, transform_indices = @transform_3, window_bounds = array<i64: 128, 128>}, {pipeline_mode = #tpu.pipeline_mode<synchronous>, transform_indices = @transform_4, window_bounds = array<i64: 128, 128>}, {pipeline_mode = #tpu.pipeline_mode<synchronous>, transform_indices = @transform_5, window_bounds = array<i64: 4, 256>}, {transform_indices = @transform_6, window_bounds = array<i64: 16, 128>}]} {
    %c0 = arith.constant 0 : index
    %c0_0 = arith.constant 0 : index
    %0 = vector.load %arg1[%c0, %c0_0] : memref<16x64xbf16, #tpu.memory_space<vmem>>, vector<16x64xbf16>
    %c0_1 = arith.constant 0 : index
    %c0_2 = arith.constant 0 : index
    %1 = vector.load %arg2[%c0_1, %c0_2] : memref<64x256xbf16, #tpu.memory_space<vmem>>, vector<64x256xbf16>
    %cst = arith.constant dense<0.000000e+00> : vector<16x256xf32>
    %2 = tpu.matmul %0, %1, %cst {dimension_numbers = #tpu.dot_dimension_numbers<[1], [0], [0], [1], [0, 0, 1, 1], [], []>} : vector<16x64xbf16>, vector<64x256xbf16>, vector<16x256xf32> -> vector<16x256xf32>
    %c0_3 = arith.constant 0 : index
    %c0_4 = arith.constant 0 : index
    %3 = vector.load %arg6[%c0_3, %c0_4] : memref<4x256xf32, #tpu.memory_space<vmem>>, vector<1x256xf32>
    %4 = vector.broadcast %3 : vector<1x256xf32> to vector<16x256xf32>
    %5 = arith.addf %2, %4 : vector<16x256xf32>
    %cst_5 = arith.constant 0.000000e+00 : f32
    %6 = vector.broadcast %cst_5 : f32 to vector<16x256xf32>
    %7 = arith.maximumf %5, %6 : vector<16x256xf32>
    %8 = arith.truncf %7 : vector<16x256xf32> to vector<16x256xbf16>
    %c0_6 = arith.constant 0 : index
    %c0_7 = arith.constant 0 : index
    %9 = vector.load %arg3[%c0_6, %c0_7] : memref<256x128xbf16, #tpu.memory_space<vmem>>, vector<256x128xbf16>
    %cst_8 = arith.constant dense<0.000000e+00> : vector<16x128xf32>
    %10 = tpu.matmul %8, %9, %cst_8 {dimension_numbers = #tpu.dot_dimension_numbers<[1], [0], [0], [1], [0, 0, 1, 1], [], []>} : vector<16x256xbf16>, vector<256x128xbf16>, vector<16x128xf32> -> vector<16x128xf32>
    %c1 = arith.constant 1 : index
    %c0_9 = arith.constant 0 : index
    %11 = vector.load %arg6[%c1, %c0_9] : memref<4x256xf32, #tpu.memory_space<vmem>>, vector<1x128xf32>
    %12 = vector.broadcast %11 : vector<1x128xf32> to vector<16x128xf32>
    %13 = arith.addf %10, %12 : vector<16x128xf32>
    %cst_10 = arith.constant 0.000000e+00 : f32
    %14 = vector.broadcast %cst_10 : f32 to vector<16x128xf32>
    %15 = arith.maximumf %13, %14 : vector<16x128xf32>
    %16 = arith.truncf %15 : vector<16x128xf32> to vector<16x128xbf16>
    %c0_11 = arith.constant 0 : index
    %c0_12 = arith.constant 0 : index
    %17 = vector.load %arg4[%c0_11, %c0_12] : memref<128x128xbf16, #tpu.memory_space<vmem>>, vector<128x128xbf16>
    %cst_13 = arith.constant dense<0.000000e+00> : vector<16x128xf32>
    %18 = tpu.matmul %16, %17, %cst_13 {dimension_numbers = #tpu.dot_dimension_numbers<[1], [0], [0], [1], [0, 0, 1, 1], [], []>} : vector<16x128xbf16>, vector<128x128xbf16>, vector<16x128xf32> -> vector<16x128xf32>
    %c2 = arith.constant 2 : index
    %c0_14 = arith.constant 0 : index
    %19 = vector.load %arg6[%c2, %c0_14] : memref<4x256xf32, #tpu.memory_space<vmem>>, vector<1x128xf32>
    %20 = vector.broadcast %19 : vector<1x128xf32> to vector<16x128xf32>
    %21 = arith.addf %18, %20 : vector<16x128xf32>
    %cst_15 = arith.constant 0.000000e+00 : f32
    %22 = vector.broadcast %cst_15 : f32 to vector<16x128xf32>
    %23 = arith.maximumf %21, %22 : vector<16x128xf32>
    %24 = arith.truncf %23 : vector<16x128xf32> to vector<16x128xbf16>
    %c0_16 = arith.constant 0 : index
    %c0_17 = arith.constant 0 : index
    %25 = vector.load %arg5[%c0_16, %c0_17] : memref<128x128xbf16, #tpu.memory_space<vmem>>, vector<128x128xbf16>
    %cst_18 = arith.constant dense<0.000000e+00> : vector<16x128xf32>
    %26 = tpu.matmul %24, %25, %cst_18 {dimension_numbers = #tpu.dot_dimension_numbers<[1], [0], [0], [1], [0, 0, 1, 1], [], []>} : vector<16x128xbf16>, vector<128x128xbf16>, vector<16x128xf32> -> vector<16x128xf32>
    %c3 = arith.constant 3 : index
    %c0_19 = arith.constant 0 : index
    %27 = vector.load %arg6[%c3, %c0_19] : memref<4x256xf32, #tpu.memory_space<vmem>>, vector<1x128xf32>
    %28 = vector.broadcast %27 : vector<1x128xf32> to vector<16x128xf32>
    %29 = arith.addf %26, %28 : vector<16x128xf32>
    %30 = arith.truncf %29 : vector<16x128xf32> to vector<16x128xbf16>
    %c0_20 = arith.constant 0 : index
    %c0_21 = arith.constant 0 : index
    %31 = vector.load %arg7[%c0_20, %c0_21] : memref<16x128xbf16, #tpu.memory_space<vmem>>, vector<16x128xbf16>
    tpu.vector_store %arg7[%c0_20, %c0_21], %30 {strides = array<i32>} : memref<16x128xbf16, #tpu.memory_space<vmem>>, vector<16x128xbf16>,
    return
  }
  func.func @transform_0(%arg0: i32) -> (i32, i32) {
    %c0_i32 = arith.constant 0 : i32
    %c0_i32_0 = arith.constant 0 : i32
    return %arg0, %c0_i32 : i32, i32
  }
  func.func @transform_1(%arg0: i32) -> (i32, i32) {
    %c0_i32 = arith.constant 0 : i32
    %c0_i32_0 = arith.constant 0 : i32
    %c0_i32_1 = arith.constant 0 : i32
    return %c0_i32, %c0_i32_0 : i32, i32
  }
  func.func @transform_2(%arg0: i32) -> (i32, i32) {
    %c0_i32 = arith.constant 0 : i32
    %c0_i32_0 = arith.constant 0 : i32
    %c0_i32_1 = arith.constant 0 : i32
    return %c0_i32, %c0_i32_0 : i32, i32
  }
  func.func @transform_3(%arg0: i32) -> (i32, i32) {
    %c0_i32 = arith.constant 0 : i32
    %c0_i32_0 = arith.constant 0 : i32
    %c0_i32_1 = arith.constant 0 : i32
    return %c0_i32, %c0_i32_0 : i32, i32
  }
  func.func @transform_4(%arg0: i32) -> (i32, i32) {
    %c0_i32 = arith.constant 0 : i32
    %c0_i32_0 = arith.constant 0 : i32
    %c0_i32_1 = arith.constant 0 : i32
    return %c0_i32, %c0_i32_0 : i32, i32
  }
  func.func @transform_5(%arg0: i32) -> (i32, i32) {
    %c0_i32 = arith.constant 0 : i32
    %c0_i32_0 = arith.constant 0 : i32
    %c0_i32_1 = arith.constant 0 : i32
    return %c0_i32, %c0_i32_0 : i32, i32
  }
  func.func @transform_6(%arg0: i32) -> (i32, i32) {
    %c0_i32 = arith.constant 0 : i32
    %c0_i32_0 = arith.constant 0 : i32
    return %arg0, %c0_i32 : i32, i32
  }
}

</mosaic_0001>

<bundles_post_ra>
// kernel: tpu_custom_call.1
= control target key start
LH: loop header
LB: loop body
LE: loop exit
PB: predicated region body
PF: predicated region fallthrough
CT: control target
= control target key end

     0   :  { %11 = vsyncpa [#allocation3], 0  ;;  %s1139_s0 = inlined_call_operand.hbm [shape: bf16[16,64], index: 0, kind: input, shape index: {}]   ;;  %s1140_s1 = inlined_call_operand.hbm [shape: bf16[64,256], index: 1, kind: input, shape index: {}]   ;;  %s1141_s2 = inlined_call_operand.hbm [shape: bf16[256,128], index: 2, kind: input, shape index: {}]   ;;  %s1142_s3 = inlined_call_operand.hbm [shape: bf16[128,128], index: 3, kind: input, shape index: {}]   ;;  %s1143_s4 = inlined_call_operand.hbm [shape: bf16[128,128], index: 4, kind: input, shape index: {}]   ;;  %s1144_s5 = inlined_call_operand.vmem [shape: f32[4,256], index: 5, kind: input, shape index: {}]   ;;  %s1145_s6 = inlined_call_operand.hbm [shape: bf16[16,128], index: 6, kind: output, shape index: {}]  }
   0x1   :  { %12 = vsyncpa [#allocation6], 0 }
   0x2   :  { %13 = vsyncpa [#allocation9], 0 }
   0x3   :  { %14 = vsyncpa [#allocation4], 0  ;;  %s974_s21 = smov [#allocation5]   ;;  %s834_s25 = scalar_lea.hbm %s1140_s1, 1024 }
   0x4   :  { %s32_s22 = sshll.u32 %s974_s21, 4  ;;  %p835_p0 = scmp.ne.s32.totalorder %s1140_s1, %s834_s25  ;;  %s33_s22 = int_to_ptr.vmem [resolvable:$true] %s32_s22 }
   0x5   :  { %p838_p1 = scmp.lt.u32.totalorder %s834_s25, %s1140_s1 }
   0x7   :  { %p840_p2 = pnand %p838_p1, %p835_p0 }
   0x9   :  { %843 = shalt.err (!%p840_p2)
}
   0xa   :  { %s844_s30 = scalar_lea.vmem %s33_s22, 1024  ;;  %p849_p4 = scmp.lt.s32.totalorder %s33_s22, %s33_s22 }
   0xb   :  { %p845_p3 = scmp.ne.s32.totalorder %s33_s22, %s844_s30  ;;  %p850_p5 = scmp.lt.s32.totalorder %s844_s30, %s844_s30 }
   0xd   :  { %p851_p6 = por %p850_p5, %p849_p4 }
   0xf   :  { %p852_p7 = pnand %p851_p6, %p845_p3 }
  0x11   :  { %855 = shalt.err (!%p852_p7)
}
  0x12   :  { %s975_s7 = smov 128   ;;  %s976_s8 = smov 8  }
  0x13   :  { %38 = dma.hbm_to_vmem [thread:$0]  %s1140_s1, 1024, %s33_s22, [#allocation6], %s975_s7, %s975_s7, %s976_s8  }
  0x14   :  { %s977_s11 = smov [#allocation8]   ;;  %s978_s13 = smov [#allocation2]  }
  0x15   :  { %s56_s12 = sshll.u32 %s977_s11, 4  ;;  %s20_s14 = sshll.u32 %s978_s13, 4  ;;  %s57_s12 = int_to_ptr.vmem [resolvable:$true] %s56_s12  ;;  %s21_s14 = int_to_ptr.vmem [resolvable:$true] %s20_s14 }
  0x16   :  { %s856_s17 = scalar_lea.hbm %s1142_s3, 1024 }
  0x17   :  { %p857_p8 = scmp.ne.s32.totalorder %s1142_s3, %s856_s17  ;;  %p860_p9 = scmp.lt.u32.totalorder %s856_s17, %s1142_s3 }
  0x19   :  { %p862_p10 = pnand %p860_p9, %p857_p8 }
  0x1b   :  { %865 = shalt.err (!%p862_p10)
}
  0x1c   :  { %s866_s1 = scalar_lea.vmem %s57_s12, 1024  ;;  %p871_p12 = scmp.lt.s32.totalorder %s57_s12, %s57_s12 }
  0x1d   :  { %p867_p11 = scmp.ne.s32.totalorder %s57_s12, %s866_s1  ;;  %p872_p13 = scmp.lt.s32.totalorder %s866_s1, %s866_s1 }
  0x1f   :  { %p873_p0 = por %p872_p13, %p871_p12 }
  0x21   :  { %p874_p1 = pnand %p873_p0, %p867_p11 }
  0x23   :  { %877 = shalt.err (!%p874_p1)
}
  0x24   :  { %s979_s22 = smov 64   ;;  %s980_s23 = smov 4  }
  0x25   :  { %62 = dma.hbm_to_vmem [thread:$0]  %s1142_s3, 1024, %s57_s12, [#allocation9], %s979_s22, %s979_s22, %s980_s23  }
  0x26   :  { %s878_s28 = scalar_lea.hbm %s1139_s0, 128 }
  0x27   :  { %p879_p2 = scmp.ne.s32.totalorder %s1139_s0, %s878_s28  ;;  %p882_p3 = scmp.lt.u32.totalorder %s878_s28, %s1139_s0 }
  0x29   :  { %p884_p4 = pnand %p882_p3, %p879_p2 }
  0x2b   :  { %887 = shalt.err (!%p884_p4)
}
  0x2c   :  { %s888_s9 = scalar_lea.vmem %s21_s14, 128  ;;  %p893_p6 = scmp.lt.s32.totalorder %s21_s14, %s21_s14 }
  0x2d   :  { %p889_p5 = scmp.ne.s32.totalorder %s21_s14, %s888_s9  ;;  %p894_p7 = scmp.lt.s32.totalorder %s888_s9, %s888_s9 }
  0x2f   :  { %p895_p8 = por %p894_p7, %p893_p6 }
  0x31   :  { %p896_p9 = pnand %p895_p8, %p889_p5 }
  0x33   :  { %899 = shalt.err (!%p896_p9)
}
  0x34   :  { %26 = dma.hbm_to_vmem [thread:$0]  %s1139_s0, 128, %s21_s14, [#allocation3], %s979_s22, %s979_s22, %s980_s23  }
  0x35   :  { %s981_s11 = smov [#allocation7]   ;;  %s982_s13 = smov [#allocation10]  }
  0x36   :  { %s44_s12 = sshll.u32 %s981_s11, 4  ;;  %s68_s15 = sshll.u32 %s982_s13, 4  ;;  %s45_s12 = int_to_ptr.vmem [resolvable:$true] %s44_s12  ;;  %s69_s15 = int_to_ptr.vmem [resolvable:$true] %s68_s15 }
  0x37   :  { %s900_s18 = scalar_lea.hbm %s1141_s2, 2048 }
  0x38   :  { %p901_p10 = scmp.ne.s32.totalorder %s1141_s2, %s900_s18  ;;  %p904_p11 = scmp.lt.u32.totalorder %s900_s18, %s1141_s2 }
  0x3a   :  { %p906_p12 = pnand %p904_p11, %p901_p10 }
  0x3c   :  { %909 = shalt.err (!%p906_p12)
}
  0x3d   :  { %s910_s0 = scalar_lea.vmem %s45_s12, 2048  ;;  %p915_p0 = scmp.lt.s32.totalorder %s45_s12, %s45_s12 }
  0x3e   :  { %p911_p13 = scmp.ne.s32.totalorder %s45_s12, %s910_s0  ;;  %p916_p1 = scmp.lt.s32.totalorder %s910_s0, %s910_s0 }
  0x40   :  { %p917_p2 = por %p916_p1, %p915_p0 }
  0x42   :  { %p918_p3 = pnand %p917_p2, %p911_p13 }
  0x44   :  { %921 = shalt.err (!%p918_p3)
}
  0x45   :  { %50 = dma.hbm_to_vmem [thread:$0]  %s1141_s2, 2048, %s45_s12, [#allocation6], %s979_s22, %s979_s22, %s980_s23  }
  0x46   :  { %s922_s27 = scalar_lea.hbm %s1143_s4, 1024 }
  0x47   :  { %p923_p4 = scmp.ne.s32.totalorder %s1143_s4, %s922_s27  ;;  %p926_p5 = scmp.lt.u32.totalorder %s922_s27, %s1143_s4 }
  0x49   :  { %p928_p6 = pnand %p926_p5, %p923_p4 }
  0x4b   :  { %931 = shalt.err (!%p928_p6)
}
  0x4c   :  { %s932_s8 = scalar_lea.vmem %s69_s15, 1024  ;;  %p937_p8 = scmp.lt.s32.totalorder %s69_s15, %s69_s15 }
  0x4d   :  { %p933_p7 = scmp.ne.s32.totalorder %s69_s15, %s932_s8  ;;  %p938_p9 = scmp.lt.s32.totalorder %s932_s8, %s932_s8 }
  0x4f   :  { %p939_p10 = por %p938_p9, %p937_p8 }
  0x51   :  { %p940_p11 = pnand %p939_p10, %p933_p7 }
  0x53   :  { %943 = shalt.err (!%p940_p11)
}
  0x54   :  { %74 = dma.hbm_to_vmem [thread:$0]  %s1143_s4, 1024, %s69_s15, [#allocation9], %s979_s22, %s979_s22, %s980_s23  }
  0x55   :  { %966 = dma.done.wait [#allocation3], 128  }
  0x56   :  { %967 = vsyncadd [#allocation3], 4294967168 }
  0x57   :  { %968 = dma.done.wait [#allocation6], 3072  }
  0x58   :  { %969 = vsyncadd [#allocation6], 4294964224 }
  0x59   :  { %970 = dma.done.wait [#allocation9], 2048  }
  0x5a   :  { %971 = vsyncadd [#allocation9], 4294965248  ;;  %v983_v0 = vmov 0   ;;  %v789_v1 = vld [vmem:[#allocation5 + $0x4] ss:$8 sps:$4 sm:$0xff]   ;;  %v806_v13 = vld [vmem:[#allocation7 + $0x50] sm:$0xff]   ;;  %v105_v32 = vlaneseq }
  0x5b   :  { %196 = vmatprep.mubr.bf16.mxu0 %v983_v0  ;;  %v791_v2 = vld [vmem:[#allocation5] ss:$8 sps:$4 sm:$0xff]   ;;  %164 = vmatprep.subr.bf16.mxu0 %v789_v1  ;;  %v792_v3 = vld [vmem:[#allocation5 + $0x14] ss:$8 sps:$4 sm:$0xff]   ;;  %v794_v4 = vld [vmem:[#allocation5 + $0x10] ss:$8 sps:$4 sm:$0xff]  }
  0x5c   :  { %165 = vmatpush1.bf16.msra.mxu0 %v791_v2  ;;  %v795_v5 = vld [vmem:[#allocation5 + $0x24] ss:$8 sps:$4 sm:$0xff]   ;;  %v797_v6 = vld [vmem:[#allocation5 + $0x20] ss:$8 sps:$4 sm:$0xff]   ;;  %v798_v7 = vld [vmem:[#allocation5 + $0x34] ss:$8 sps:$4 sm:$0xff]  }
  0x5d   :  { %166 = vmatprep.subr.bf16.mxu0 %v792_v3  ;;  %v802_v8 = vld [vmem:[#allocation7 + $0x40] sm:$0xff]   ;;  %v800_v10 = vld [vmem:[#allocation5 + $0x30] ss:$8 sps:$4 sm:$0xff]   ;;  %v804_v11 = vld [vmem:[#allocation7 + $0x48] sm:$0xff]   ;;  %vm160_vm0 = vcmask 523264   ;;  %v984_v27 = vmov 0.0  }
  0x5e   :  { %v803_v9 = vld [vmem:[#allocation7] sm:$0xff]   ;;  %696 = vmatprep.subr.bf16.mxu1 %v802_v8  ;;  %v805_v12 = vld [vmem:[#allocation7 + $0x8] sm:$0xff]   ;;  %v801_v14 = vld [vmem:[#allocation2] sm:$0xff]   ;;  %v106_v33 = vshrl.u32 %v105_v32, 7  ;;  %vm985_vm1 = vmmov 0   ;;  %s986_s17 = smov [#allocation11]  }
  0x5f   :  { %697 = vmatpush3.bf16.msra.mxu1 %v803_v9  ;;  %v807_v15 = vld [vmem:[#allocation7 + $0x10] sm:$0xff]   ;;  %v808_v16 = vld [vmem:[#allocation7 + $0x58] sm:$0xff]   ;;  %v810_v18 = vld [vmem:[#allocation7 + $0x60] sm:$0xff]   ;;  %s628_s18 = sshll.u32 %s986_s17, 4  ;;  %s629_s18 = int_to_ptr.vmem [resolvable:$true] %s628_s18 }
  0x60   :  { %167 = vmatpush1.bf16.msra.mxu0 %v794_v4  ;;  %698 = vmatprep.subr.bf16.mxu1 %v804_v11  ;;  %v809_v17 = vld [vmem:[#allocation7 + $0x18] sm:$0xff]   ;;  %v811_v19 = vld [vmem:[#allocation7 + $0x20] sm:$0xff]   ;;  %v812_v20 = vld [vmem:[#allocation7 + $0x68] sm:$0xff]   ;;  %v107_v34 = vsub.s32 0, %v106_v33  ;;  %v111_v36 = vsub.s32 1, %v106_v33  ;;  %s944_s19 = scalar_lea.vmem %s629_s18, 128  ;;  %p949_p13 = scmp.lt.s32.totalorder %s629_s18, %s629_s18 }
  0x61   :  { %168 = vmatprep.subr.bf16.mxu0 %v795_v5  ;;  %v813_v21 = vld [vmem:[#allocation7 + $0x28] sm:$0xff]   ;;  %v814_v22 = vld [vmem:[#allocation7 + $0x70] sm:$0xff]   ;;  %v816_v24 = vld [vmem:[#allocation7 + $0x78] sm:$0xff]   ;;  %p945_p12 = scmp.ne.s32.totalorder %s629_s18, %s944_s19  ;;  %p950_p0 = scmp.lt.s32.totalorder %s944_s19, %s944_s19 }
  0x62   :  { %v815_v23 = vld [vmem:[#allocation7 + $0x30] sm:$0xff]   ;;  %v817_v25 = vld [vmem:[#allocation7 + $0x38] sm:$0xff]   ;;  %v818_v26 = vld [vmem:[#allocation8] sm:$0xff]  }
  0x63   :  { %699 = vmatpush3.bf16.msra.mxu1 %v805_v12  ;;  %v819_v28 = vld [vmem:[#allocation8 + $0x8] sm:$0xff]   ;;  %v820_v29 = vld [vmem:[#allocation8 + $0x10] sm:$0xff]   ;;  %v821_v30 = vld [vmem:[#allocation8 + $0x18] sm:$0xff]   ;;  %p951_p1 = por %p950_p0, %p949_p13 }
  0x64   :  { %169 = vmatpush1.bf16.msra.mxu0 %v797_v6  ;;  %700 = vmatprep.subr.bf16.mxu1 %v806_v13  ;;  %v822_v31 = vld [vmem:[#allocation8 + $0x20] sm:$0xff]   ;;  %v103_v35 = vld [vmem:[%s1144_s5] ss:$4 sm:$0x3]  ;;  %v823_v53 = vld [vmem:[#allocation8 + $0x28] sm:$0xff]  }
  0x65   :  { %170 = vmatprep.subr.bf16.mxu0 %v798_v7  ;;  %v108_v37 = vrot.slane %v103_v35, %v107_v34  ;;  %v112_v38 = vrot.slane %v103_v35, %v111_v36  ;;  %v824_v54 = vld [vmem:[#allocation8 + $0x30] sm:$0xff]   ;;  %v825_v55 = vld [vmem:[#allocation8 + $0x38] sm:$0xff]   ;;  %v826_v56 = vld [vmem:[#allocation10] sm:$0xff]   ;;  %p952_p2 = pnand %p951_p1, %p945_p12 }
  0x66   :  { %v827_v57 = vld [vmem:[#allocation10 + $0x8] sm:$0xff]   ;;  %v828_v58 = vld [vmem:[#allocation10 + $0x10] sm:$0xff]   ;;  %v829_v59 = vld [vmem:[#allocation10 + $0x18] sm:$0xff]  }
  0x67   :  { %701 = vmatpush3.bf16.msra.mxu1 %v807_v15  ;;  %v830_v60 = vld [vmem:[#allocation10 + $0x20] sm:$0xff]   ;;  %v831_v61 = vld [vmem:[#allocation10 + $0x28] sm:$0xff]   ;;  %v652_v63 = vld [vmem:[%s1144_s5 + $0x1] ss:$0 sm:$0xff] }
  0x68   :  { %171 = vmatpush1.bf16.msra.mxu0 %v800_v10  ;;  %702 = vmatprep.subr.bf16.mxu1 %v808_v16  ;;  %v832_v10 = vld [vmem:[#allocation10 + $0x30] sm:$0xff]   ;;  %v833_v11 = vld [vmem:[#allocation10 + $0x38] sm:$0xff]  }
  0x69   :  { %736 = vmatprep.subr.bf16.mxu0 %v984_v27  ;;  %v669_v12 = vld [vmem:[%s1144_s5 + $0x2] ss:$0 sm:$0xff] }
  0x6b   :  { %651 = vmatmul.mubr.msk.bf16.vlgmr.msra.gmra.mrb[0].mxu0 %vm160_vm0, %v801_v14  ;;  %703 = vmatpush3.bf16.msra.mxu1 %v809_v17 }
  0x6c   :  { %704 = vmatprep.subr.bf16.mxu1 %v810_v18  ;;  %737 = vmatpush3.bf16.msra.mxu0 %v818_v26 }
  0x6d   :  { %738 = vmatprep.subr.bf16.mxu0 %v984_v27  ;;  %752 = vmatprep.mubr.msk.bf16.mxu0 %vm985_vm1, %v984_v27 }
  0x6f   :  { %705 = vmatpush3.bf16.msra.mxu1 %v811_v19 }
  0x70   :  { %706 = vmatprep.subr.bf16.mxu1 %v812_v20  ;;  %739 = vmatpush3.bf16.msra.mxu0 %v819_v28 }
  0x71   :  { %740 = vmatprep.subr.bf16.mxu0 %v984_v27 }
  0x73   :  { %707 = vmatpush3.bf16.msra.mxu1 %v813_v21 }
  0x74   :  { %708 = vmatprep.subr.bf16.mxu1 %v814_v22  ;;  %741 = vmatpush3.bf16.msra.mxu0 %v820_v29  ;;  %v678_v22 = vld [vmem:[%s1144_s5 + $0x3] ss:$0 sm:$0xff] }
  0x75   :  { %742 = vmatprep.subr.bf16.mxu0 %v984_v27 }
  0x77   :  { %709 = vmatpush3.bf16.msra.mxu1 %v815_v23 }
  0x78   :  { %710 = vmatprep.subr.bf16.mxu1 %v816_v24  ;;  %743 = vmatpush3.bf16.msra.mxu0 %v821_v30 }
  0x79   :  { %744 = vmatprep.subr.bf16.mxu0 %v984_v27 }
  0x7b   :  { %711 = vmatpush3.bf16.msra.mxu1 %v817_v25 }
  0x7c   :  { %756 = vmatprep.subr.bf16.mxu1 %v984_v27  ;;  %745 = vmatpush3.bf16.msra.mxu0 %v822_v31 }
  0x7d   :  { %746 = vmatprep.subr.bf16.mxu0 %v984_v27 }
  0x80   :  { %747 = vmatpush3.bf16.msra.mxu0 %v823_v53 }
  0x81   :  { %748 = vmatprep.subr.bf16.mxu0 %v984_v27 }
  0x84   :  { %749 = vmatpush3.bf16.msra.mxu0 %v824_v54 }
  0x85   :  { %750 = vmatprep.subr.bf16.mxu0 %v984_v27 }
  0x88   :  { %751 = vmatpush3.bf16.msra.mxu0 %v825_v55 }
 0x13e   :  { %v198_v39 = vpop.f32.mrb[0].mxu0 }
 0x13f   :  { %v199_v40 = vadd.f32 %v198_v39, %v108_v37  ;;  %v200_v41 = vpop.f32.mrb[1].mxu0 }
 0x140   :  { %v201_v42 = vadd.f32 %v200_v41, %v112_v38  ;;  %v202_v43 = vpop.f32.mrb[2].mxu0 }
 0x141   :  { %v203_v44 = vadd.f32 %v202_v43, %v108_v37  ;;  %v204_v45 = vpop.f32.mrb[3].mxu0  ;;  %v207_v47 = vmax.f32 %v199_v40, 0.0 }
 0x142   :  { %v205_v46 = vadd.f32 %v204_v45, %v112_v38  ;;  %v208_v49 = vmax.f32 %v201_v42, 0.0 }
 0x143   :  { %v209_v48 = vmax.f32 %v203_v44, 0.0 }
 0x144   :  { %v210_v50 = vmax.f32 %v205_v46, 0.0 }
 0x145   :  { %v211_v51 = vpack.c.bf16 %v209_v48, %v207_v47 }
 0x146   :  { %v212_v52 = vpack.c.bf16 %v210_v50, %v208_v49 }
 0x148   :  { %378 = vmatprep.mubr.bf16.mxu1 %v212_v52 }
 0x149   :  { %379 = vmatmul.mubr.bf16.vlgmr.msra.gmra.mrb[0].mxu1 %v211_v51 }
 0x14a   :  { %772 = vmatprep.mubr.msk.bf16.mxu1 %vm985_vm1, %v984_v27  ;;  %757 = vmatpush3.bf16.msra.mxu1 %v826_v56 }
 0x14b   :  { %758 = vmatprep.subr.bf16.mxu1 %v984_v27 }
 0x14e   :  { %759 = vmatpush3.bf16.msra.mxu1 %v827_v57 }
 0x14f   :  { %760 = vmatprep.subr.bf16.mxu1 %v984_v27 }
 0x152   :  { %761 = vmatpush3.bf16.msra.mxu1 %v828_v58 }
 0x153   :  { %762 = vmatprep.subr.bf16.mxu1 %v984_v27 }
 0x156   :  { %763 = vmatpush3.bf16.msra.mxu1 %v829_v59 }
 0x157   :  { %764 = vmatprep.subr.bf16.mxu1 %v984_v27 }
 0x15a   :  { %765 = vmatpush3.bf16.msra.mxu1 %v830_v60 }
 0x15b   :  { %766 = vmatprep.subr.bf16.mxu1 %v984_v27 }
 0x15e   :  { %767 = vmatpush3.bf16.msra.mxu1 %v831_v61 }
 0x15f   :  { %768 = vmatprep.subr.bf16.mxu1 %v984_v27 }
 0x162   :  { %769 = vmatpush3.bf16.msra.mxu1 %v832_v10 }
 0x163   :  { %770 = vmatprep.subr.bf16.mxu1 %v984_v27 }
 0x166   :  { %771 = vmatpush3.bf16.msra.mxu1 %v833_v11 }
 0x21c   :  { %v712_v62 = vpop.f32.mrb[0].mxu1 }
 0x21d   :  { %v713_v0 = vpop.f32.mrb[1].mxu1 }
 0x21e   :  { %v714_v1 = vadd.f32 %v713_v0, %v712_v62  ;;  %v715_v2 = vpop.f32.mrb[2].mxu1 }
 0x21f   :  { %v716_v3 = vpop.f32.mrb[3].mxu1 }
 0x220   :  { %v381_v4 = vadd.f32 %v714_v1, %v652_v63  ;;  %v717_v5 = vadd.f32 %v716_v3, %v715_v2 }
 0x222   :  { %v384_v6 = vadd.f32 %v717_v5, %v652_v63  ;;  %v387_v7 = vmax.f32 %v381_v4, 0.0 }
 0x224   :  { %v388_v8 = vmax.f32 %v384_v6, 0.0 }
 0x226   :  { %v389_v9 = vpack.c.bf16 %v388_v8, %v387_v7 }
 0x228   :  { %753 = vmatmul.mubr.bf16.vlgmr.msra.gmra.mrb[4].mxu0 %v389_v9 }
 0x2fb   :  { %v493_v13 = vpop.f32.mrb[4].mxu0 }
 0x2fc   :  { %v494_v14 = vadd.f32 %v669_v12, %v493_v13  ;;  %v754_v15 = vpop.f32.mrb[5].mxu0 }
 0x2fd   :  { %v496_v16 = vpop.f32.mrb[6].mxu0 }
 0x2fe   :  { %v497_v17 = vadd.f32 %v669_v12, %v496_v16  ;;  %v755_v18 = vpop.f32.mrb[7].mxu0  ;;  %v500_v19 = vmax.f32 %v494_v14, 0.0 }
 0x300   :  { %v501_v20 = vmax.f32 %v497_v17, 0.0 }
 0x302   :  { %v502_v21 = vpack.c.bf16 %v501_v20, %v500_v19 }
 0x304   :  { %773 = vmatmul.mubr.bf16.vlgmr.msra.gmra.mrb[4].mxu1 %v502_v21 }
 0x3d7   :  { %v606_v23 = vpop.f32.mrb[4].mxu1 }
 0x3d8   :  { %v774_v24 = vpop.f32.mrb[5].mxu1  ;;  %v607_v26 = vadd.f32 %v678_v22, %v606_v23 }
 0x3d9   :  { %v609_v25 = vpop.f32.mrb[6].mxu1 }
 0x3da   :  { %v610_v27 = vadd.f32 %v678_v22, %v609_v25  ;;  %v775_v28 = vpop.f32.mrb[7].mxu1 }
 0x3dc   :  { %v694_v29 = vpack.c.bf16 %v610_v27, %v607_v26 }
 0x3de   :  { %695 = vst [vmem:[#allocation11] sm:$0xff] %v694_v29  }
 0x3df   :  { %955 = shalt.err (!%p952_p2)
}
 0x3e0   :  { %s956_s21 = scalar_lea.hbm %s1145_s6, 128 }
 0x3e1   :  { %p957_p3 = scmp.ne.s32.totalorder %s1145_s6, %s956_s21  ;;  %p960_p4 = scmp.lt.u32.totalorder %s956_s21, %s1145_s6 }
 0x3e3   :  { %p962_p5 = pnand %p960_p4, %p957_p3 }
 0x3e5   :  { %965 = shalt.err (!%p962_p5)
}
 0x3e6   :  { %634 = dma.vmem_to_hbm [thread:$0]  %s629_s18, 128, %s1145_s6, [#allocation4], %s979_s22, %s979_s22, %s980_s23  }
 0x3e7   :  { %972 = dma.done.wait [#allocation4], 128  }
 0x3e8   :  { %973 = vsyncadd [#allocation4], 4294967168 }
 0x3e9   :  { %638 = vsyncpa [#allocation3], 1 }
 0x3ea   :  { %639 = vsyncpa [#allocation6], 1 }
 0x3eb   :  { %640 = vsyncpa [#allocation9], 1 }
 0x3ec   :  { %641 = vsyncpa [#allocation4], 1 }

</bundles_post_ra>
